<compile_context>
chip_gen: v7x
topology: tpu7x:2x2x1
jax: 0.10.0
libtpu: 0.0.40
codegen_flags: <defaults>
</compile_context>

<pallas_src>
import math

import jax
import jax.numpy as jnp
from jax import lax
from jax.experimental import pallas as pl
from jax.experimental.pallas import tpu as pltpu


def _make_luong_kernel(batch, has_mask, with_weights, mm_dtype):
    """Kernel variant: static `batch` unrolled per grid step, optional mask
    input and attention-weight output, matmul-operand dtype `mm_dtype`."""

    def kernel(*refs):
        q_ref, ctx_ref, w_ref = refs[0], refs[1], refs[2]
        pos = 3
        mask_ref = None
        if has_mask:
            mask_ref = refs[pos]
            pos += 1
        out_ref = refs[pos]
        attn_ref = refs[pos + 1] if with_weights else None

        w_lin = w_ref[...].astype(mm_dtype)                      # (H, C)

        # Small static batch -> unrolled 2-D MXU matmuls (no batched
        # dot_general, no in-kernel transposes).
        for b in range(batch):
            q = q_ref[:, b, :].astype(mm_dtype)                  # (Tq, H)
            ctx = ctx_ref[:, b, :].astype(mm_dtype)              # (Lc, C)

            # (q @ W) . ctx  ==  q . (ctx @ W^T); Linear bias dropped
            # (constant along the softmax axis -> no effect on w or c).
            q_proj = jnp.dot(q, w_lin,
                             preferred_element_type=jnp.float32)  # (Tq, C)

            # Scores: contraction over the channel axis (last dims of BOTH
            # operands -> no transpose on the score path), f32 accumulation.
            e = lax.dot_general(
                q_proj.astype(mm_dtype), ctx,
                dimension_numbers=(((1,), (1,)), ((), ())),
                preferred_element_type=jnp.float32)               # (Tq, Lc)
            if has_mask:
                e = e + mask_ref[b:b + 1, :]                      # (1, Lc)

            # Softmax over the context axis — exact f32 normalization
            # (approx reciprocal removed: it broke the tolerance check).
            m = jnp.max(e, axis=-1, keepdims=True)
            p = jnp.exp(e - m)
            s = jnp.sum(p, axis=-1, keepdims=True)
            w = p / s                                             # (Tq, Lc)

            c = jnp.dot(w.astype(mm_dtype), ctx,
                        preferred_element_type=jnp.float32)       # (Tq, C)

            out_ref[:, b, :] = c.astype(out_ref.dtype)
            if with_weights:
                attn_ref[b, :, :] = w.astype(attn_ref.dtype)

    return kernel


def luong_attention(query, context, attn_weight, attn_bias=None, inf_mask=None,
                    requires_weight=False, q_block=None, use_bf16_matmul=False):
    """query: (Lq, B, H), context: (Lc, B, C), attn_weight: (H, C),
    attn_bias: (H,) or None, inf_mask: (B, Lc) or None.
    Returns c: (Lq, B, C) (and w: (B, Lq, Lc) if requires_weight).

    Notes:
      * attn_bias is accepted for API parity but intentionally unused: it adds
        a per-(b, q) constant to the pre-softmax scores, and softmax over the
        context axis is shift-invariant, so it cannot change the outputs.
      * On v7x pick q_block so that Lq // q_block >= 2 (both TensorCores)."""
    Lq, B, H = query.shape
    Lc, Bc, C = context.shape
    assert B == Bc
    assert attn_weight.shape == (H, C)
    del attn_bias  # softmax shift-invariance -> dead compute (perf review #1)

    Tq = Lq if q_block is None else q_block
    assert Lq % Tq == 0
    if requires_weight:
        # Tq is the second-to-last dim of the (B, Lq, Lc) weights block.
        assert Tq == Lq or Tq % 8 == 0
    grid = (Lq // Tq,)

    mm_dtype = query.dtype
    if use_bf16_matmul and mm_dtype == jnp.float32:
        mm_dtype = jnp.bfloat16  # bf16 operands, f32 accumulation on the MXU

    has_mask = inf_mask is not None

    # Native-layout BlockSpecs: last two block dims equal the full array dims.
    in_specs = [
        pl.BlockSpec((Tq, B, H), lambda qi: (qi, 0, 0)),   # query  (Lq, B, H)
        pl.BlockSpec((Lc, B, C), lambda qi: (0, 0, 0)),    # context, resident
        pl.BlockSpec((H, C), lambda qi: (0, 0)),           # linear weight
    ]
    args = [query, context, attn_weight]
    if has_mask:
        in_specs.append(pl.BlockSpec((B, Lc), lambda qi: (0, 0)))
        args.append(inf_mask)

    out_dtype = query.dtype
    if requires_weight:
        out_shape = (jax.ShapeDtypeStruct((Lq, B, C), out_dtype),
                     jax.ShapeDtypeStruct((B, Lq, Lc), out_dtype))
        out_specs = (pl.BlockSpec((Tq, B, C), lambda qi: (qi, 0, 0)),
                     pl.BlockSpec((B, Tq, Lc), lambda qi: (0, qi, 0)))
    else:
        out_shape = jax.ShapeDtypeStruct((Lq, B, C), out_dtype)
        out_specs = pl.BlockSpec((Tq, B, C), lambda qi: (qi, 0, 0))

    # Explicit VMEM budget: 2x (double-buffer) per BlockSpec tile + headroom.
    itm = jnp.dtype(query.dtype).itemsize
    est = 2 * (Tq * B * H + Lc * B * C + Tq * B * C + H * C) * itm
    if requires_weight:
        est += 2 * B * Tq * Lc * itm
    if has_mask:
        est += 2 * B * Lc * jnp.dtype(inf_mask.dtype).itemsize
    vmem_limit = int(min(max(4 * est, 16 * 2**20), 64 * 2**20))

    kernel = _make_luong_kernel(B, has_mask, requires_weight, mm_dtype)

    return pl.pallas_call(
        kernel,
        out_shape=out_shape,
        grid=grid,
        in_specs=in_specs,
        out_specs=out_specs,
        compiler_params=pltpu.CompilerParams(
            dimension_semantics=("parallel",),
            vmem_limit_bytes=vmem_limit),
    )(*args)


def _reference(query, context, attn_weight, attn_bias, inf_mask=None):
    """Pure-JAX port of the PyTorch forward (bias included)."""
    q = jnp.transpose(query, (1, 0, 2)).astype(jnp.float32)      # (B, Lq, H)
    ctx = jnp.transpose(context, (1, 0, 2)).astype(jnp.float32)  # (B, Lc, C)
    e = jnp.einsum("blc,hc->blh", ctx, attn_weight.astype(jnp.float32))
    e = e + attn_bias.astype(jnp.float32)
    e = jnp.einsum("bqh,blh->bql", q, e)
    if inf_mask is not None:
        e = e + inf_mask[:, None, :]
    w = jax.nn.softmax(e, axis=2)
    c = jnp.einsum("bql,blc->bqc", w, ctx)
    return jnp.transpose(c, (1, 0, 2)), w


if __name__ == "__main__":
    # Small shapes consistent with the module; H != C and Lq != Lc on purpose.
    B, Lq, Lc, H, C = 2, 8, 10, 32, 16

    key = jax.random.PRNGKey(0)
    k_q, k_ctx, k_w, k_b = jax.random.split(key, 4)

    query = jax.random.normal(k_q, (Lq, B, H), dtype=jnp.float32)
    context = jax.random.normal(k_ctx, (Lc, B, C), dtype=jnp.float32)

    # xavier_uniform_(gain=1) style weight (H, C); NON-zero bias to show the
    # kernel's bias-drop is exact (softmax shift-invariance).
    bound = math.sqrt(6.0 / (H + C))
    attn_weight = jax.random.uniform(k_w, (H, C), dtype=jnp.float32,
                                     minval=-bound, maxval=bound)
    attn_bias = 0.1 * jax.random.normal(k_b, (H,), dtype=jnp.float32)

    # Additive mask: mask out the last three context positions for batch 1.
    inf_mask = jnp.zeros((B, Lc), dtype=jnp.float32)
    inf_mask = inf_mask.at[1, -3:].set(-1e9)

    # References (bias included).
    c_exp, w_exp = _reference(query, context, attn_weight, attn_bias, inf_mask)
    c_exp_nm, _ = _reference(query, context, attn_weight, attn_bias, None)

    # 1) masked, with attention weights (single grid step, whole batch).
    c1, w1 = luong_attention(query, context, attn_weight, attn_bias,
                             inf_mask=inf_mask, requires_weight=True)
    # 2) masked, context-only output (no attention-weight writeback at all).
    c2 = luong_attention(query, context, attn_weight, attn_bias,
                         inf_mask=inf_mask, requires_weight=False)
    # 3) unmasked, tiled over Lq -> multi-step "parallel" grid (2 steps).
    c3 = luong_attention(query, context, attn_weight, attn_bias,
                         inf_mask=None, requires_weight=False, q_block=4)
    # 4) masked, bf16 MXU operands (f32 accumulation) — reduced precision.
    c4 = luong_attention(query, context, attn_weight, attn_bias,
                         inf_mask=inf_mask, requires_weight=False,
                         use_bf16_matmul=True)
    jax.block_until_ready((c1, w1, c2, c3, c4))

    assert c1.shape == (Lq, B, C)
    assert w1.shape == (B, Lq, Lc)

    tol = dict(atol=2e-3, rtol=2e-3)
    assert jnp.allclose(c1, c_exp, **tol)
    assert jnp.allclose(w1, w_exp, **tol)
    assert jnp.allclose(c2, c_exp, **tol)
    assert jnp.allclose(c3, c_exp_nm, **tol)
    # Relaxed tolerance for the bf16-operand fast path.
    assert jnp.allclose(c4, c_exp, atol=8e-2, rtol=8e-2)

    print("KERNEL_OK")
</pallas_src>

<mosaic_0001>
module attributes {stable_mosaic.version = 11 : i64} {
  func.func @kernel(%arg0: i32, %arg1: memref<8x2x32xf32, #tpu.memory_space<vmem>>, %arg2: memref<10x2x16xf32, #tpu.memory_space<vmem>>, %arg3: memref<32x16xf32, #tpu.memory_space<vmem>>, %arg4: memref<2x10xf32, #tpu.memory_space<vmem>>, %arg5: memref<8x2x16xf32, #tpu.memory_space<vmem>>, %arg6: memref<2x8x10xf32, #tpu.memory_space<vmem>>) attributes {dimension_semantics = [#tpu.dimension_semantics<parallel>], iteration_bounds = array<i64: 1>, scalar_prefetch = 0 : i64, scratch_operands = 0 : i64, tpu.core_type = #tpu.core_type<tc>, window_params = [{transform_indices = @transform_0, window_bounds = array<i64: 8, 2, 32>}, {pipeline_mode = #tpu.pipeline_mode<synchronous>, transform_indices = @transform_1, window_bounds = array<i64: 10, 2, 16>}, {pipeline_mode = #tpu.pipeline_mode<synchronous>, transform_indices = @transform_2, window_bounds = array<i64: 32, 16>}, {pipeline_mode = #tpu.pipeline_mode<synchronous>, transform_indices = @transform_3, window_bounds = array<i64: 2, 10>}, {transform_indices = @transform_4, window_bounds = array<i64: 8, 2, 16>}, {transform_indices = @transform_5, window_bounds = array<i64: 2, 8, 10>}]} {
    %c0 = arith.constant 0 : index
    %c0_0 = arith.constant 0 : index
    %0 = vector.load %arg3[%c0, %c0_0] : memref<32x16xf32, #tpu.memory_space<vmem>>, vector<32x16xf32>
    %c0_1 = arith.constant 0 : index
    %c0_2 = arith.constant 0 : index
    %c0_3 = arith.constant 0 : index
    %1 = vector.load %arg1[%c0_1, %c0_2, %c0_3] : memref<8x2x32xf32, #tpu.memory_space<vmem>>, vector<8x1x32xf32>
    %2 = vector.shape_cast %1 : vector<8x1x32xf32> to vector<8x32xf32>
    %c0_4 = arith.constant 0 : index
    %c0_5 = arith.constant 0 : index
    %c0_6 = arith.constant 0 : index
    %3 = vector.load %arg2[%c0_4, %c0_5, %c0_6] : memref<10x2x16xf32, #tpu.memory_space<vmem>>, vector<10x1x16xf32>
    %4 = vector.shape_cast %3 : vector<10x1x16xf32> to vector<10x16xf32>
    %cst = arith.constant dense<0.000000e+00> : vector<8x16xf32>
    %5 = tpu.matmul %2, %0, %cst {dimension_numbers = #tpu.dot_dimension_numbers<[1], [0], [0], [1], [0, 0, 1, 1], [], []>} : vector<8x32xf32>, vector<32x16xf32>, vector<8x16xf32> -> vector<8x16xf32>
    %cst_7 = arith.constant dense<0.000000e+00> : vector<8x10xf32>
    %6 = tpu.matmul %5, %4, %cst_7 {dimension_numbers = #tpu.dot_dimension_numbers<[1], [1], [0], [0], [0, 0, 1, 0], [], []>} : vector<8x16xf32>, vector<10x16xf32>, vector<8x10xf32> -> vector<8x10xf32>
    %c0_8 = arith.constant 0 : index
    %c0_9 = arith.constant 0 : index
    %7 = vector.load %arg4[%c0_8, %c0_9] : memref<2x10xf32, #tpu.memory_space<vmem>>, vector<1x10xf32>
    %8 = vector.broadcast %7 : vector<1x10xf32> to vector<8x10xf32>
    %9 = arith.addf %6, %8 : vector<8x10xf32>
    %cst_10 = arith.constant dense<0xFF800000> : vector<8xf32>
    %10 = vector.multi_reduction <maximumf>, %9, %cst_10 [1] : vector<8x10xf32> to vector<8xf32>
    %11 = vector.shape_cast %10 : vector<8xf32> to vector<8x1xf32>
    %12 = vector.broadcast %11 : vector<8x1xf32> to vector<8x10xf32>
    %13 = arith.subf %9, %12 : vector<8x10xf32>
    %14 = math.exp %13 : vector<8x10xf32>
    %cst_11 = arith.constant dense<0.000000e+00> : vector<8xf32>
    %15 = vector.multi_reduction <add>, %14, %cst_11 [1] : vector<8x10xf32> to vector<8xf32>
    %16 = vector.shape_cast %15 : vector<8xf32> to vector<8x1xf32>
    %17 = vector.broadcast %16 : vector<8x1xf32> to vector<8x10xf32>
    %18 = arith.divf %14, %17 : vector<8x10xf32>
    %cst_12 = arith.constant dense<0.000000e+00> : vector<8x16xf32>
    %19 = tpu.matmul %18, %4, %cst_12 {dimension_numbers = #tpu.dot_dimension_numbers<[1], [0], [0], [1], [0, 0, 1, 1], [], []>} : vector<8x10xf32>, vector<10x16xf32>, vector<8x16xf32> -> vector<8x16xf32>
    %c0_13 = arith.constant 0 : index
    %c0_14 = arith.constant 0 : index
    %c0_15 = arith.constant 0 : index
    %20 = vector.load %arg5[%c0_13, %c0_14, %c0_15] : memref<8x2x16xf32, #tpu.memory_space<vmem>>, vector<8x1x16xf32>
    %21 = vector.shape_cast %20 : vector<8x1x16xf32> to vector<8x16xf32>
    %22 = vector.shape_cast %19 : vector<8x16xf32> to vector<8x1x16xf32>
    tpu.vector_store %arg5[%c0_13, %c0_14, %c0_15], %22 {strides = array<i32>} : memref<8x2x16xf32, #tpu.memory_space<vmem>>, vector<8x1x16xf32>,
    %c0_16 = arith.constant 0 : index
    %c0_17 = arith.constant 0 : index
    %c0_18 = arith.constant 0 : index
    %23 = vector.load %arg6[%c0_16, %c0_17, %c0_18] : memref<2x8x10xf32, #tpu.memory_space<vmem>>, vector<1x8x10xf32>
    %24 = vector.shape_cast %23 : vector<1x8x10xf32> to vector<8x10xf32>
    %25 = vector.shape_cast %18 : vector<8x10xf32> to vector<1x8x10xf32>
    tpu.vector_store %arg6[%c0_16, %c0_17, %c0_18], %25 {strides = array<i32>} : memref<2x8x10xf32, #tpu.memory_space<vmem>>, vector<1x8x10xf32>,
    %c0_19 = arith.constant 0 : index
    %c1 = arith.constant 1 : index
    %c0_20 = arith.constant 0 : index
    %26 = vector.load %arg1[%c0_19, %c1, %c0_20] : memref<8x2x32xf32, #tpu.memory_space<vmem>>, vector<8x1x32xf32>
    %27 = vector.shape_cast %26 : vector<8x1x32xf32> to vector<8x32xf32>
    %c0_21 = arith.constant 0 : index
    %c1_22 = arith.constant 1 : index
    %c0_23 = arith.constant 0 : index
    %28 = vector.load %arg2[%c0_21, %c1_22, %c0_23] : memref<10x2x16xf32, #tpu.memory_space<vmem>>, vector<10x1x16xf32>
    %29 = vector.shape_cast %28 : vector<10x1x16xf32> to vector<10x16xf32>
    %cst_24 = arith.constant dense<0.000000e+00> : vector<8x16xf32>
    %30 = tpu.matmul %27, %0, %cst_24 {dimension_numbers = #tpu.dot_dimension_numbers<[1], [0], [0], [1], [0, 0, 1, 1], [], []>} : vector<8x32xf32>, vector<32x16xf32>, vector<8x16xf32> -> vector<8x16xf32>
    %cst_25 = arith.constant dense<0.000000e+00> : vector<8x10xf32>
    %31 = tpu.matmul %30, %29, %cst_25 {dimension_numbers = #tpu.dot_dimension_numbers<[1], [1], [0], [0], [0, 0, 1, 0], [], []>} : vector<8x16xf32>, vector<10x16xf32>, vector<8x10xf32> -> vector<8x10xf32>
    %c1_26 = arith.constant 1 : index
    %c0_27 = arith.constant 0 : index
    %32 = vector.load %arg4[%c1_26, %c0_27] : memref<2x10xf32, #tpu.memory_space<vmem>>, vector<1x10xf32>
    %33 = vector.broadcast %32 : vector<1x10xf32> to vector<8x10xf32>
    %34 = arith.addf %31, %33 : vector<8x10xf32>
    %cst_28 = arith.constant dense<0xFF800000> : vector<8xf32>
    %35 = vector.multi_reduction <maximumf>, %34, %cst_28 [1] : vector<8x10xf32> to vector<8xf32>
    %36 = vector.shape_cast %35 : vector<8xf32> to vector<8x1xf32>
    %37 = vector.broadcast %36 : vector<8x1xf32> to vector<8x10xf32>
    %38 = arith.subf %34, %37 : vector<8x10xf32>
    %39 = math.exp %38 : vector<8x10xf32>
    %cst_29 = arith.constant dense<0.000000e+00> : vector<8xf32>
    %40 = vector.multi_reduction <add>, %39, %cst_29 [1] : vector<8x10xf32> to vector<8xf32>
    %41 = vector.shape_cast %40 : vector<8xf32> to vector<8x1xf32>
    %42 = vector.broadcast %41 : vector<8x1xf32> to vector<8x10xf32>
    %43 = arith.divf %39, %42 : vector<8x10xf32>
    %cst_30 = arith.constant dense<0.000000e+00> : vector<8x16xf32>
    %44 = tpu.matmul %43, %29, %cst_30 {dimension_numbers = #tpu.dot_dimension_numbers<[1], [0], [0], [1], [0, 0, 1, 1], [], []>} : vector<8x10xf32>, vector<10x16xf32>, vector<8x16xf32> -> vector<8x16xf32>
    %c0_31 = arith.constant 0 : index
    %c1_32 = arith.constant 1 : index
    %c0_33 = arith.constant 0 : index
    %45 = vector.load %arg5[%c0_31, %c1_32, %c0_33] : memref<8x2x16xf32, #tpu.memory_space<vmem>>, vector<8x1x16xf32>
    %46 = vector.shape_cast %45 : vector<8x1x16xf32> to vector<8x16xf32>
    %47 = vector.shape_cast %44 : vector<8x16xf32> to vector<8x1x16xf32>
    tpu.vector_store %arg5[%c0_31, %c1_32, %c0_33], %47 {strides = array<i32>} : memref<8x2x16xf32, #tpu.memory_space<vmem>>, vector<8x1x16xf32>,
    %c1_34 = arith.constant 1 : index
    %c0_35 = arith.constant 0 : index
    %c0_36 = arith.constant 0 : index
    %48 = vector.load %arg6[%c1_34, %c0_35, %c0_36] : memref<2x8x10xf32, #tpu.memory_space<vmem>>, vector<1x8x10xf32>
    %49 = vector.shape_cast %48 : vector<1x8x10xf32> to vector<8x10xf32>
    %50 = vector.shape_cast %43 : vector<8x10xf32> to vector<1x8x10xf32>
    tpu.vector_store %arg6[%c1_34, %c0_35, %c0_36], %50 {strides = array<i32>} : memref<2x8x10xf32, #tpu.memory_space<vmem>>, vector<1x8x10xf32>,
    return
  }
  func.func @transform_0(%arg0: i32) -> (i32, i32, i32) {
    %c0_i32 = arith.constant 0 : i32
    %c0_i32_0 = arith.constant 0 : i32
    %c0_i32_1 = arith.constant 0 : i32
    return %arg0, %c0_i32, %c0_i32_0 : i32, i32, i32
  }
  func.func @transform_1(%arg0: i32) -> (i32, i32, i32) {
    %c0_i32 = arith.constant 0 : i32
    %c0_i32_0 = arith.constant 0 : i32
    %c0_i32_1 = arith.constant 0 : i32
    %c0_i32_2 = arith.constant 0 : i32
    return %c0_i32, %c0_i32_0, %c0_i32_1 : i32, i32, i32
  }
  func.func @transform_2(%arg0: i32) -> (i32, i32) {
    %c0_i32 = arith.constant 0 : i32
    %c0_i32_0 = arith.constant 0 : i32
    %c0_i32_1 = arith.constant 0 : i32
    return %c0_i32, %c0_i32_0 : i32, i32
  }
  func.func @transform_3(%arg0: i32) -> (i32, i32) {
    %c0_i32 = arith.constant 0 : i32
    %c0_i32_0 = arith.constant 0 : i32
    %c0_i32_1 = arith.constant 0 : i32
    return %c0_i32, %c0_i32_0 : i32, i32
  }
  func.func @transform_4(%arg0: i32) -> (i32, i32, i32) {
    %c0_i32 = arith.constant 0 : i32
    %c0_i32_0 = arith.constant 0 : i32
    %c0_i32_1 = arith.constant 0 : i32
    return %arg0, %c0_i32, %c0_i32_0 : i32, i32, i32
  }
  func.func @transform_5(%arg0: i32) -> (i32, i32, i32) {
    %c0_i32 = arith.constant 0 : i32
    %c0_i32_0 = arith.constant 0 : i32
    %c0_i32_1 = arith.constant 0 : i32
    return %c0_i32, %arg0, %c0_i32_0 : i32, i32, i32
  }
}

</mosaic_0001>

<bundles_post_ra>
// kernel: tpu_custom_call.1
= control target key start
LH: loop header
LB: loop body
LE: loop exit
PB: predicated region body
PF: predicated region fallthrough
CT: control target
= control target key end

     0   :  { %11 = vsyncpa [#allocation3], 0  ;;  %v999_v3 = vmov 0.0|0.0   ;;  %vm1000_vm0 = vmmov 0   ;;  %v1001_v6 = vmov 0.0   ;;  %vm52_vm1 = vcmask 1041409   ;;  %s1304_s0 = inlined_call_operand.vmem [shape: f32[8,2,32], index: 0, kind: input, shape index: {}]   ;;  %s1305_s1 = inlined_call_operand.vmem [shape: f32[10,2,16], index: 1, kind: input, shape index: {}]   ;;  %s1306_s2 = inlined_call_operand.vmem [shape: f32[32,16], index: 2, kind: input, shape index: {}]   ;;  %s1307_s3 = inlined_call_operand.vmem [shape: f32[2,10], index: 3, kind: input, shape index: {}]   ;;  %s1308_s4 = inlined_call_operand.hbm [shape: f32[8,2,16], index: 4, kind: output, shape index: {0}]   ;;  %s1309_s5 = inlined_call_operand.hbm [shape: f32[2,8,10], index: 5, kind: output, shape index: {1}]  }
   0x1   :  { %v21_v0 = vld [vmem:[%s1306_s2] sm:$0xff]  ;;  %v22_v1 = vld [vmem:[%s1306_s2 + $0x8] sm:$0xff]  ;;  %v23_v2 = vld [vmem:[%s1306_s2 + $0x10] sm:$0xff]  ;;  %904 = vmatprep.subr.bf16.mxu0 %v999_v3  ;;  %862 = vmatprep.mubr.msk.f32.mxu0 %vm1000_vm0, %v1001_v6  ;;  %vm55_vm2 = vcmask 1042434   ;;  %vm58_vm3 = vcmask 1043459   ;;  %vm61_vm4 = vcmask 1044484  }
   0x2   :  { %v1050_v4 = vpack.c.bf16 %v22_v1, %v21_v0  ;;  %v24_v5 = vld [vmem:[%s1306_s2 + $0x18] sm:$0xff]  ;;  %v26_v7 = vld [vmem:[%s1304_s0 + $0x2] sm:$0x1]  ;;  %v27_v8 = vld [vmem:[%s1304_s0 + $0x4] sm:$0x1]  ;;  %910 = vmatprep.subr.bf16.mxu1 %v999_v3  ;;  %869 = vmatprep.mubr.msk.f32.mxu1 %vm1000_vm0, %v1001_v6  ;;  %vm64_vm5 = vcmask 1045509  }
   0x3   :  { %v28_v9 = vld [vmem:[%s1304_s0 + $0x6] sm:$0x1]  ;;  %v29_v10 = vld [vmem:[%s1304_s0 + $0x8] sm:$0x1]  ;;  %v1073_v11 = vpack.c.bf16 %v24_v5, %v23_v2  ;;  %v25_v12 = vld [vmem:[%s1304_s0] sm:$0x1] }
   0x4   :  { %906 = vmatpush3.bf16.msra.mxu0 %v1050_v4  ;;  %v30_v13 = vld [vmem:[%s1304_s0 + $0xa] sm:$0x1]  ;;  %v31_v14 = vld [vmem:[%s1304_s0 + $0xc] sm:$0x1]  ;;  %v51_v15 = vrot.slane %v26_v7, 7  ;;  %v54_v16 = vrot.slane %v27_v8, 6 }
   0x5   :  { %907 = vmatprep.subr.bf16.mxu0 %v999_v3  ;;  %v57_v17 = vrot.slane %v28_v9, 5  ;;  %v32_v18 = vld [vmem:[%s1304_s0 + $0xe] sm:$0x1]  ;;  %v60_v19 = vrot.slane %v29_v10, 4  ;;  %v63_v21 = vrot.slane %v30_v13, 3  ;;  %v66_v23 = vrot.slane %v31_v14, 2 }
   0x6   :  { %v53_v20 = vsel %vm52_vm1, %v51_v15, %v25_v12  ;;  %vm67_vm6 = vcmask 1046534   ;;  %v69_v25 = vrot.slane %v32_v18, 1  ;;  %vm70_vm7 = vcmask 1047559   ;;  %v34_v29 = vld [vmem:[%s1305_s1 + $0x2] sm:$0x1] }
   0x7   :  { %v56_v22 = vsel %vm55_vm2, %v54_v16, %v53_v20  ;;  %vm72_vm8 = vcmask 261120   ;;  %v35_v30 = vld [vmem:[%s1305_s1 + $0x4] sm:$0x1]  ;;  %v36_v32 = vld [vmem:[%s1305_s1 + $0x6] sm:$0x1]  ;;  %v160_v38 = vrot.slane %v34_v29, 7 }
   0x8   :  { %909 = vmatpush3.bf16.msra.mxu0 %v1073_v11  ;;  %v59_v24 = vsel %vm58_vm3, %v57_v17, %v56_v22  ;;  %v37_v33 = vld [vmem:[%s1305_s1 + $0x8] sm:$0x1]  ;;  %v33_v34 = vld [vmem:[%s1305_s1] sm:$0x1]  ;;  %v38_v35 = vld [vmem:[%s1305_s1 + $0xa] sm:$0x1] }
   0x9   :  { %914 = vmatprep.subr.bf16.mxu0 %v999_v3  ;;  %v62_v26 = vsel %vm61_vm4, %v60_v19, %v59_v24  ;;  %v39_v36 = vld [vmem:[%s1305_s1 + $0xc] sm:$0x1]  ;;  %v42_v37 = vld [vmem:[%s1305_s1 + $0x12] sm:$0x1]  ;;  %v162_v39 = vrot.slane %v35_v30, 6  ;;  %v164_v40 = vrot.slane %v36_v32, 5 }
   0xa   :  { %v65_v27 = vsel %vm64_vm5, %v63_v21, %v62_v26  ;;  %v40_v41 = vld [vmem:[%s1305_s1 + $0xe] sm:$0x1]  ;;  %v166_v42 = vrot.slane %v37_v33, 4 }
   0xb   :  { %v68_v28 = vsel %vm67_vm6, %v66_v23, %v65_v27 }
   0xc   :  { %v71_v31 = vsel %vm70_vm7, %v69_v25, %v68_v28 }
   0xd   :  { %863 = vmatmul.mubr.msk.f32.vlgmr.msra.gmra.mrb[0].mxu0 %vm72_vm8, %v71_v31 }
   0xe   :  { %876 = vmatprep.mubr.msk.f32.mxu0 %vm1000_vm0, %v1001_v6 }
   0xf   :  { %12 = vsyncpa [#allocation5], 0  ;;  %v161_v43 = vsel %vm52_vm1, %v160_v38, %v33_v34  ;;  %v168_v44 = vrot.slane %v38_v35, 3  ;;  %v174_v45 = vrot.slane %v42_v37, 7  ;;  %v41_v46 = vld [vmem:[%s1305_s1 + $0x10] sm:$0x1] }
  0x10   :  { %v163_v47 = vsel %vm55_vm2, %v162_v39, %v161_v43  ;;  %v170_v48 = vrot.slane %v39_v36, 2  ;;  %v172_v50 = vrot.slane %v40_v41, 1  ;;  %vm176_vm9 = vcmask 130048   ;;  %v411_v60 = vld [vmem:[%s1304_s0 + $0x1] sm:$0x1] }
  0x11   :  { %v165_v49 = vsel %vm58_vm3, %v164_v40, %v163_v47  ;;  %v175_v53 = vsel %vm52_vm1, %v174_v45, %v41_v46  ;;  %vm1140_vm10 = vmpackc.low %vm176_vm9, %vm176_vm9  ;;  %v412_v61 = vld [vmem:[%s1304_s0 + $0x3] sm:$0x1]  ;;  %v413_v62 = vld [vmem:[%s1304_s0 + $0x5] sm:$0x1]  ;;  %vm254_vm11 = vcmask 80896   ;;  %vm270_vm12 = vcmask 1041408  }
  0x12   :  { %v167_v51 = vsel %vm61_vm4, %v166_v42, %v165_v49  ;;  %v414_v63 = vld [vmem:[%s1304_s0 + $0x7] sm:$0x1]  ;;  %v415_v0 = vld [vmem:[%s1304_s0 + $0x9] sm:$0x1]  ;;  %v416_v1 = vld [vmem:[%s1304_s0 + $0xb] sm:$0x1] }
  0x13   :  { %v169_v52 = vsel %vm64_vm5, %v168_v44, %v167_v51  ;;  %v417_v2 = vld [vmem:[%s1304_s0 + $0xd] sm:$0x1]  ;;  %v439_v5 = vrot.slane %v413_v62, 6  ;;  %v418_v7 = vld [vmem:[%s1304_s0 + $0xf] sm:$0x1]  ;;  %v441_v8 = vrot.slane %v414_v63, 5 }
  0x14   :  { %v171_v54 = vsel %vm67_vm6, %v170_v48, %v169_v52  ;;  %v443_v9 = vrot.slane %v415_v0, 4  ;;  %v447_v13 = vrot.slane %v417_v2, 2  ;;  %v449_v15 = vrot.slane %v418_v7, 1  ;;  %v819_v20 = vld [vmem:[%s1307_s3] ss:$0 sm:$0xff] }
  0x15   :  { %v173_v55 = vsel %vm70_vm7, %v172_v50, %v171_v54  ;;  %v420_v28 = vld [vmem:[%s1305_s1 + $0x3] sm:$0x1]  ;;  %v421_v31 = vld [vmem:[%s1305_s1 + $0x5] sm:$0x1]  ;;  %v419_v33 = vld [vmem:[%s1305_s1 + $0x1] sm:$0x1]  ;;  %v348_v0 = vlaneseq }
  0x16   :  { %v1144_v57 = vpack.c.bf16 %v175_v53, %v173_v55  ;;  %v538_v32 = vrot.slane %v420_v28, 7  ;;  %v422_v34 = vld [vmem:[%s1305_s1 + $0x7] sm:$0x1]  ;;  %v540_v35 = vrot.slane %v421_v31, 6  ;;  %v423_v37 = vld [vmem:[%s1305_s1 + $0x9] sm:$0x1] }
  0x17   :  { %v542_v38 = vrot.slane %v422_v34, 5  ;;  %v424_v40 = vld [vmem:[%s1305_s1 + $0xb] sm:$0x1]  ;;  %v544_v41 = vrot.slane %v423_v37, 4  ;;  %v425_v43 = vld [vmem:[%s1305_s1 + $0xd] sm:$0x1] }
  0x18   :  { %913 = vmatpush3.bf16.xpose.msk.msra.mxu1 %vm1140_vm10, %v1144_v57  ;;  %v539_v36 = vsel %vm52_vm1, %v538_v32, %v419_v33  ;;  %v546_v44 = vrot.slane %v424_v40, 3  ;;  %v426_v46 = vld [vmem:[%s1305_s1 + $0xf] sm:$0x1]  ;;  %v548_v47 = vrot.slane %v425_v43, 2  ;;  %vm1002_vm13 = vmmov 1  }
  0x19   :  { %918 = vmatprep.subr.bf16.mxu1 %v999_v3  ;;  %v541_v39 = vsel %vm55_vm2, %v540_v35, %v539_v36  ;;  %vm916_vm14 = vmpackc.low %vm270_vm12, %vm1002_vm13  ;;  %v550_v49 = vrot.slane %v426_v46, 1  ;;  %v428_v51 = vld [vmem:[%s1305_s1 + $0x13] sm:$0x1]  ;;  %v427_v54 = vld [vmem:[%s1305_s1 + $0x11] sm:$0x1]  ;;  %v349_v2 = vshrl.u32 %v348_v0, 7 }
  0x1a   :  { %v543_v42 = vsel %vm58_vm3, %v542_v38, %v541_v39  ;;  %917 = vmatpush3.bf16.msk.msra.mxu0 %vm916_vm14, %v1144_v57  ;;  %v552_v53 = vrot.slane %v428_v51, 7  ;;  %v1003_v62 = vmov 1966171168   ;;  %vm401_vm15 = vcmask 122880  }
  0x1b   :  { %v545_v45 = vsel %vm61_vm4, %v544_v41, %v543_v42  ;;  %924 = vmatprep.subr.bf16.mxu0 %v999_v3  ;;  %v346_v63 = vunpack.c.l.s4 %v1003_v62 }
  0x1c   :  { %v547_v48 = vsel %vm64_vm5, %v546_v44, %v545_v45  ;;  %v553_v55 = vsel %vm52_vm1, %v552_v53, %v427_v54 }
  0x1d   :  { %v549_v50 = vsel %vm67_vm6, %v548_v47, %v547_v48 }
  0x1e   :  { %v551_v52 = vsel %vm70_vm7, %v550_v49, %v549_v50 }
  0xe0   :  { %v141_v58 = vpop.f32.mrb[0].mxu0 }
  0xe1   :  { %v864_v59 = vpop.f32.mrb[1].mxu0  ;;  %870 = vmatmul.mubr.msk.f32.vlgmr.msra.gmra.mrb[0].mxu1 %vm176_vm9, %v141_v58  ;;  %v925_v58 = vpack.c.bf16 %v553_v55, %v551_v52 }
  0xe2   :  { %920 = vmatpush3.bf16.msra.mxu1 %v1050_v4  ;;  %887 = vmatprep.mubr.msk.f32.mxu1 %vm1000_vm0, %v1001_v6  ;;  %v437_v4 = vrot.slane %v412_v61, 7 }
  0xe3   :  { %921 = vmatprep.subr.bf16.mxu1 %v999_v3 }
  0xe4   :  { %v438_v10 = vsel %vm52_vm1, %v437_v4, %v411_v60 }
  0xe5   :  { %v440_v12 = vsel %vm55_vm2, %v439_v5, %v438_v10 }
  0xe6   :  { %923 = vmatpush3.bf16.msra.mxu1 %v1073_v11  ;;  %v445_v11 = vrot.slane %v416_v1, 3  ;;  %v442_v14 = vsel %vm58_vm3, %v441_v8, %v440_v12  ;;  %v347_v1 = vunpack.c.0.s8 %v346_v63 }
  0xe7   :  { %928 = vmatprep.subr.bf16.mxu1 %v999_v3  ;;  %v444_v16 = vsel %vm61_vm4, %v443_v9, %v442_v14 }
  0xe8   :  { %v446_v17 = vsel %vm64_vm5, %v445_v11, %v444_v16  ;;  %v1243_v4 = vsub.s32 %v347_v1, %v349_v2 }
  0xe9   :  { %v448_v18 = vsel %vm67_vm6, %v447_v13, %v446_v17 }
  0xea   :  { %v450_v19 = vsel %vm70_vm7, %v449_v15, %v448_v18  ;;  %v826_v15 = vld [vmem:[%s1307_s3 + $0x1] ss:$0 sm:$0xff]  ;;  %s1004_s3 = smov [#allocation4]  }
  0xeb   :  { %888 = vmatmul.mubr.msk.f32.vlgmr.msra.gmra.mrb[2].mxu1 %vm72_vm8, %v450_v19  ;;  %s803_s22 = sshll.u32 %s1004_s3, 4  ;;  %s804_s22 = int_to_ptr.vmem [resolvable:$true] %s803_s22 }
  0xec   :  { %901 = vmatprep.mubr.msk.f32.mxu1 %vm1000_vm0, %v1001_v6  ;;  %931 = vmatpush3.bf16.msk.msra.mxu1 %vm916_vm14, %v925_v58  ;;  %s951_s23 = scalar_lea.vmem %s804_s22, 256  ;;  %p956_p1 = scmp.lt.s32.totalorder %s804_s22, %s804_s22 }
  0xed   :  { %p952_p0 = scmp.ne.s32.totalorder %s804_s22, %s951_s23  ;;  %p957_p2 = scmp.lt.s32.totalorder %s951_s23, %s951_s23 }
  0xef   :  { %p958_p3 = por %p957_p2, %p956_p1 }
  0xf1   :  { %p959_p4 = pnand %p958_p3, %p952_p0 }
 0x1b4   :  { %v250_v21 = vpop.f32.mrb[0].mxu1 }
 0x1b5   :  { %v251_v22 = vadd.f32 %v819_v20, %v250_v21  ;;  %v871_v23 = vpop.f32.mrb[1].mxu1 }
 0x1b7   :  { %v255_v24 = vsel %vm254_vm11, %v251_v22, -inf }
 0x1b8   :  { %256 = vmax.xlane.f32.xlu0 %v255_v24 }
 0x1be   :  { %v519_v57 = vpop.f32.mrb[2].mxu1 }
 0x1bf   :  { %v889_v59 = vpop.f32.mrb[3].mxu1 }
 0x245   :  { %v257_v25 = vpop.xlane.xlu0 %256 }
 0x246   :  { %v258_v26 = vsub.f32 %v251_v22, %v257_v25 }
 0x248   :  { %v259_v27 = vmul.f32 1.442695, %v258_v26 }
 0x24a   :  { %943 = vpow2.f32 %v259_v27 }
 0x254   :  { %v944_v29 = vpop.eup %943 }
 0x255   :  { %v261_v30 = vsel %vm254_vm11, %v944_v29, 0.0 }
 0x256   :  { %262 = vadd.xlane.f32.xlu0 %v261_v30 }
 0x2e3   :  { %v263_v60 = vpop.xlane.xlu0 %262 }
 0x2e4   :  { %945 = vrcp.f32 %v263_v60 }
 0x2ee   :  { %v946_v3 = vpop.eup %945 }
 0x2ef   :  { %v265_v61 = vmul.f32 %v946_v3, %v944_v29 }
 0x2f1   :  { %410 = vst.msk [vmem:[#allocation4] sm:$0xff] %vm254_vm11, %v265_v61  ;;  %877 = vmatmul.mubr.msk.f32.vlgmr.msra.gmra.mrb[2].mxu0 %vm254_vm11, %v265_v61 }
 0x2f2   :  { %927 = vmatpush3.bf16.xpose.msk.msra.mxu0 %vm1140_vm10, %v925_v58  ;;  %894 = vmatprep.mubr.msk.f32.mxu0 %vm1000_vm0, %v1001_v6 }
 0x2f9   :  { %895 = vmatmul.mubr.msk.f32.vlgmr.msra.gmra.mrb[4].mxu0 %vm176_vm9, %v519_v57 }
 0x3c4   :  { %v339_v5 = vpop.f32.mrb[2].mxu0 }
 0x3c5   :  { %v344_v7 = vcombine.high %v339_v5, %v339_v5  ;;  %v351_v8 = vrot.slane %v339_v5, %v1243_v4  ;;  %v878_v9 = vpop.f32.mrb[3].mxu0 }
 0x3c7   :  { %v358_v56 = vrot.slane %v344_v7, %v1243_v4  ;;  %v359_v10 = vcombine.high %v351_v8, %v351_v8  ;;  %v367_v6 = vrot.slane %v351_v8, %v1243_v4 }
 0x3c9   :  { %v360_v11 = vcombine.high %v358_v56, %v358_v56  ;;  %v374_v12 = vrot.slane %v358_v56, %v1243_v4  ;;  %v381_v13 = vrot.slane %v359_v10, %v1243_v4  ;;  %v389_v14 = vcombine.high %v367_v6, %v367_v6  ;;  %402 = vst.msk [vmem:[#allocation2] sm:$0x1] %vm401_vm15, %v367_v6 }
 0x3cb   :  { %v388_v16 = vrot.slane %v360_v11, %v1243_v4  ;;  %v390_v17 = vcombine.high %v374_v12, %v374_v12  ;;  %v391_v18 = vcombine.high %v381_v13, %v381_v13  ;;  %403 = vst.msk [vmem:[#allocation2 + $0x2] sm:$0x1] %vm401_vm15, %v381_v13  ;;  %404 = vst.msk [vmem:[#allocation2 + $0x4] sm:$0x1] %vm401_vm15, %v389_v14 }
 0x3cc   :  { %406 = vst.msk [vmem:[#allocation2 + $0x8] sm:$0x1] %vm401_vm15, %v374_v12  ;;  %v627_v19 = vpop.f32.mrb[4].mxu0 }
 0x3cd   :  { %v392_v20 = vcombine.high %v388_v16, %v388_v16  ;;  %405 = vst.msk [vmem:[#allocation2 + $0x6] sm:$0x1] %vm401_vm15, %v391_v18  ;;  %407 = vst.msk [vmem:[#allocation2 + $0xa] sm:$0x1] %vm401_vm15, %v388_v16  ;;  %v628_v21 = vadd.f32 %v826_v15, %v627_v19  ;;  %v896_v22 = vpop.f32.mrb[5].mxu0 }
 0x3ce   :  { %408 = vst.msk [vmem:[#allocation2 + $0xc] sm:$0x1] %vm401_vm15, %v390_v17 }
 0x3cf   :  { %409 = vst.msk [vmem:[#allocation2 + $0xe] sm:$0x1] %vm401_vm15, %v392_v20  ;;  %v631_v23 = vsel %vm254_vm11, %v628_v21, -inf }
 0x3d0   :  { %632 = vmax.xlane.f32.xlu1 %v631_v23 }
 0x45d   :  { %v633_v24 = vpop.xlane.xlu1 %632 }
 0x45e   :  { %v634_v25 = vsub.f32 %v628_v21, %v633_v24 }
 0x460   :  { %v635_v26 = vmul.f32 1.442695, %v634_v25 }
 0x462   :  { %947 = vpow2.f32 %v635_v26 }
 0x46c   :  { %v948_v27 = vpop.eup %947 }
 0x46d   :  { %v637_v28 = vsel %vm254_vm11, %v948_v27, 0.0 }
 0x46e   :  { %638 = vadd.xlane.f32.xlu1 %v637_v28 }
 0x4fb   :  { %v639_v29 = vpop.xlane.xlu1 %638 }
 0x4fc   :  { %949 = vrcp.f32 %v639_v29 }
 0x506   :  { %v950_v30 = vpop.eup %949 }
 0x507   :  { %v641_v31 = vmul.f32 %v950_v30, %v948_v27 }
 0x509   :  { %785 = vst.msk [vmem:[#allocation4 + $0x8] sm:$0xff] %vm254_vm11, %v641_v31  ;;  %902 = vmatmul.mubr.msk.f32.vlgmr.msra.gmra.mrb[4].mxu1 %vm254_vm11, %v641_v31 }
 0x50a   :  { %962 = shalt.err (!%p959_p4)
}
 0x50b   :  { %s963_s0 = scalar_lea.hbm %s1309_s5, 256 }
 0x50c   :  { %p964_p5 = scmp.ne.s32.totalorder %s1309_s5, %s963_s0  ;;  %p967_p6 = scmp.lt.u32.totalorder %s963_s0, %s1309_s5 }
 0x50e   :  { %p969_p7 = pnand %p967_p6, %p964_p5 }
 0x510   :  { %972 = shalt.err (!%p969_p7)
}
 0x511   :  { %s1005_s30 = smov 128   ;;  %s1006_s6 = smov 8  }
 0x512   :  { %809 = dma.vmem_to_hbm [thread:$0]  %s804_s22, 256, %s1309_s5, [#allocation5], %s1005_s30, %s1005_s30, %s1006_s6  }
 0x513   :  { %s1007_s2 = smov [#allocation2]  }
 0x514   :  { %s791_s5 = sshll.u32 %s1007_s2, 4  ;;  %s792_s5 = int_to_ptr.vmem [resolvable:$true] %s791_s5 }
 0x515   :  { %s973_s9 = scalar_lea.vmem %s792_s5, 256  ;;  %p978_p9 = scmp.lt.s32.totalorder %s792_s5, %s792_s5 }
 0x516   :  { %p974_p8 = scmp.ne.s32.totalorder %s792_s5, %s973_s9  ;;  %p979_p10 = scmp.lt.s32.totalorder %s973_s9, %s973_s9 }
 0x518   :  { %p980_p11 = por %p979_p10, %p978_p9 }
 0x51a   :  { %p981_p12 = pnand %p980_p11, %p974_p8 }
 0x5dc   :  { %v714_v32 = vpop.f32.mrb[4].mxu1 }
 0x5dd   :  { %v719_v33 = vcombine.high %v714_v32, %v714_v32  ;;  %v726_v34 = vrot.slane %v714_v32, %v1243_v4  ;;  %v903_v35 = vpop.f32.mrb[5].mxu1 }
 0x5df   :  { %v733_v36 = vrot.slane %v719_v33, %v1243_v4  ;;  %v734_v37 = vcombine.high %v726_v34, %v726_v34  ;;  %v742_v38 = vrot.slane %v726_v34, %v1243_v4 }
 0x5e1   :  { %v735_v39 = vcombine.high %v733_v36, %v733_v36  ;;  %v749_v40 = vrot.slane %v733_v36, %v1243_v4  ;;  %v756_v41 = vrot.slane %v734_v37, %v1243_v4  ;;  %v764_v42 = vcombine.high %v742_v38, %v742_v38  ;;  %776 = vst.msk [vmem:[#allocation2 + $0x1] sm:$0x1] %vm401_vm15, %v742_v38 }
 0x5e3   :  { %v763_v43 = vrot.slane %v735_v39, %v1243_v4  ;;  %v765_v44 = vcombine.high %v749_v40, %v749_v40  ;;  %v766_v45 = vcombine.high %v756_v41, %v756_v41  ;;  %777 = vst.msk [vmem:[#allocation2 + $0x3] sm:$0x1] %vm401_vm15, %v756_v41  ;;  %778 = vst.msk [vmem:[#allocation2 + $0x5] sm:$0x1] %vm401_vm15, %v764_v42 }
 0x5e4   :  { %780 = vst.msk [vmem:[#allocation2 + $0x9] sm:$0x1] %vm401_vm15, %v749_v40 }
 0x5e5   :  { %v767_v46 = vcombine.high %v763_v43, %v763_v43  ;;  %779 = vst.msk [vmem:[#allocation2 + $0x7] sm:$0x1] %vm401_vm15, %v766_v45  ;;  %781 = vst.msk [vmem:[#allocation2 + $0xb] sm:$0x1] %vm401_vm15, %v763_v43 }
 0x5e6   :  { %782 = vst.msk [vmem:[#allocation2 + $0xd] sm:$0x1] %vm401_vm15, %v765_v44 }
 0x5e7   :  { %783 = vst.msk [vmem:[#allocation2 + $0xf] sm:$0x1] %vm401_vm15, %v767_v46 }
 0x5e8   :  { %984 = shalt.err (!%p981_p12)
}
 0x5e9   :  { %s985_s12 = scalar_lea.hbm %s1308_s4, 256 }
 0x5ea   :  { %p986_p13 = scmp.ne.s32.totalorder %s1308_s4, %s985_s12  ;;  %p989_p0 = scmp.lt.u32.totalorder %s985_s12, %s1308_s4 }
 0x5ec   :  { %p991_p1 = pnand %p989_p0, %p986_p13 }
 0x5ee   :  { %994 = shalt.err (!%p991_p1)
}
 0x5ef   :  { %s1008_s17 = smov 32   ;;  %s1009_s18 = smov 2  }
 0x5f0   :  { %797 = dma.vmem_to_hbm [thread:$0]  %s792_s5, 256, %s1308_s4, [#allocation3], %s1008_s17, %s1008_s17, %s1009_s18  }
 0x5f1   :  { %995 = dma.done.wait [#allocation3], 256  }
 0x5f2   :  { %996 = vsyncadd [#allocation3], 4294967040 }
 0x5f3   :  { %997 = dma.done.wait [#allocation5], 256  }
 0x5f4   :  { %998 = vsyncadd [#allocation5], 4294967040 }
 0x5f5   :  { %816 = vsyncpa [#allocation3], 1 }
 0x5f6   :  { %817 = vsyncpa [#allocation5], 1 }

</bundles_post_ra>
